<compile_context>
chip_gen: v7x
topology: tpu7x:2x2x1
jax: 0.10.0
libtpu: 0.0.40
codegen_flags: <defaults>
</compile_context>

<pallas_src>
import jax
import jax.numpy as jnp
from jax import lax
from jax.experimental import pallas as pl
from jax.experimental.pallas import tpu as pltpu


def _round_up(x, m):
    return ((x + m - 1) // m) * m


# --------------------------------------------------------------------------
# Kernel: one row tile -> one expert (grouped matmul, P2 scalar prefetch)
# --------------------------------------------------------------------------
def _gmm_grouped_kernel(te_ref, tv_ref, z_ref, l_ref, m_ref, o_ref):
    t = pl.program_id(0)

    @pl.when(tv_ref[t] > 0)
    def _compute():
        # z @ L_e.T without materializing the transpose: contract z dim 1
        # with L_e dim 1.  MXU matmul, f32 accumulation.
        s = lax.dot_general(
            z_ref[...], l_ref[0],
            dimension_numbers=(((1,), (1,)), ((), ())),
            preferred_element_type=jnp.float32)                    # (tm, n_zp)
        o_ref[...] = (s + m_ref[0].astype(jnp.float32)).astype(o_ref.dtype)

    @pl.when(tv_ref[t] == 0)
    def _pad_tile():
        o_ref[...] = jnp.zeros_like(o_ref)


# --------------------------------------------------------------------------
# Wrappers
# --------------------------------------------------------------------------
def gmm_grouped_forward(z, expert_ids, m_all, l_all, *, tm=256,
                        compute_dtype=None, vmem_limit_bytes=None):
    """out[i] = m_all[expert_ids[i]] + z[i] @ l_all[expert_ids[i]].T

    z          : (N, n_z)
    expert_ids : (N,) int  flat (class, component) expert id per row
    m_all      : (E, n_z)        stacked means
    l_all      : (E, n_z, n_z)   stacked L factors
    """
    N, n_z = z.shape
    E = m_all.shape[0]
    assert m_all.shape == (E, n_z)
    assert l_all.shape == (E, n_z, n_z)
    out_dtype = z.dtype

    # Optional reduced-precision operands (bf16 recommended on v6e/v7x);
    # means stay f32 and the MXU accumulates in f32.
    if compute_dtype is not None:
        z = z.astype(compute_dtype)
        l_all = l_all.astype(compute_dtype)
    m_all = m_all.astype(jnp.float32)

    # Lane-dense feature dim; 128-aligned row tile.
    n_zp = _round_up(n_z, 128)
    tm = _round_up(max(128, min(tm, _round_up(N, 128))), 128)

    if n_zp != n_z:
        z = jnp.pad(z, ((0, 0), (0, n_zp - n_z)))
        m_all = jnp.pad(m_all, ((0, 0), (0, n_zp - n_z)))
        l_all = jnp.pad(l_all, ((0, 0), (0, n_zp - n_z), (0, n_zp - n_z)))

    expert_ids = expert_ids.astype(jnp.int32)

    # ---- group rows by expert: sort, pad every group to a multiple of tm, so
    # ---- each row tile touches exactly one expert.
    order = jnp.argsort(expert_ids)                            # (N,)
    sorted_experts = expert_ids[order]
    counts = jnp.zeros((E,), jnp.int32).at[expert_ids].add(1)  # rows per expert
    grp_start = jnp.cumsum(counts) - counts                    # unpadded starts
    padded_counts = ((counts + tm - 1) // tm) * tm             # tile-aligned sizes
    pad_start = jnp.cumsum(padded_counts) - padded_counts      # padded starts
    pad_end = jnp.cumsum(padded_counts)

    n_buf = _round_up(N + E * (tm - 1), tm)                    # static upper bound
    n_tiles = n_buf // tm

    rank = jnp.arange(N, dtype=jnp.int32) - grp_start[sorted_experts]
    dest = pad_start[sorted_experts] + rank                    # scatter targets
    z_buf = jnp.zeros((n_buf, n_zp), z.dtype).at[dest].set(z[order])

    # Per-tile expert id + "tile has at least one real row" flag (SMEM prefetch).
    tile_start = jnp.arange(n_tiles, dtype=jnp.int32) * tm
    te_raw = jnp.searchsorted(pad_end, tile_start, side='right')
    tile_expert = jnp.minimum(te_raw, E - 1).astype(jnp.int32)
    tile_valid = ((te_raw < E) &
                  (tile_start < pad_start[tile_expert] + counts[tile_expert])
                  ).astype(jnp.int32)

    m_all3 = m_all.reshape(E, 1, n_zp)

    nbytes = lambda a: int(a.size) * a.dtype.itemsize
    cost = pl.CostEstimate(
        flops=2 * n_buf * n_zp * n_zp,
        transcendentals=0,
        bytes_accessed=int(nbytes(z_buf) + nbytes(l_all) + nbytes(m_all3)
                           + n_buf * n_zp * jnp.dtype(out_dtype).itemsize),
    )

    out_buf = pl.pallas_call(
        _gmm_grouped_kernel,
        out_shape=jax.ShapeDtypeStruct((n_buf, n_zp), out_dtype),
        grid_spec=pltpu.PrefetchScalarGridSpec(
            num_scalar_prefetch=2,
            grid=(n_tiles,),
            in_specs=[
                # z row tile (sorted / padded)
                pl.BlockSpec((tm, n_zp), lambda t, te, tv: (t, 0)),
                # L_e for this tile's expert (data-dependent; re-DMA'd only
                # when the expert changes between consecutive tiles)
                pl.BlockSpec((1, n_zp, n_zp), lambda t, te, tv: (te[t], 0, 0)),
                # m_e for this tile's expert (added once per tile)
                pl.BlockSpec((1, 1, n_zp), lambda t, te, tv: (te[t], 0, 0)),
            ],
            out_specs=pl.BlockSpec((tm, n_zp), lambda t, te, tv: (t, 0)),
        ),
        compiler_params=pltpu.CompilerParams(
            dimension_semantics=("parallel",),
            vmem_limit_bytes=vmem_limit_bytes,
        ),
        cost_estimate=cost,
    )(tile_expert, tile_valid, z_buf, l_all, m_all3)

    # Un-group: original row j sits at padded position dest[r] with order[r] = j.
    src_pos = jnp.zeros((N,), jnp.int32).at[order].set(dest)
    return out_buf[src_pos][:, :n_z]


def sample_component_ids(key, y, mixing_logits, *, n_components):
    """Flat (class, component) expert id per row; forward values identical to
    F.one_hot(y) x F.gumbel_softmax(mixing_logits[y], hard=True) selection."""
    # TODO(synk): the straight-through gradient of gumbel_softmax(hard=True)
    # is not reproduced; this port is forward-only.
    g = jax.random.gumbel(key, (y.shape[0], n_components), dtype=jnp.float32)
    comp = jnp.argmax(mixing_logits[y] + g, axis=-1)
    return (y * n_components + comp).astype(jnp.int32)


def gmm_multiclass_forward(z, y, m_all, l_all, mixing_logits, key, *, tm=256,
                           compute_dtype=None, vmem_limit_bytes=None):
    """Full ReparameterizedGMM_Linear_Multiclass.forward(z, y)."""
    num_classes, n_components = mixing_logits.shape
    expert_ids = sample_component_ids(key, y, mixing_logits,
                                      n_components=n_components)
    return gmm_grouped_forward(z, expert_ids, m_all, l_all, tm=tm,
                               compute_dtype=compute_dtype,
                               vmem_limit_bytes=vmem_limit_bytes)
    # TODO(synk): logp()/entropy() (logdet, inverse) are not ported; only forward().


# --------------------------------------------------------------------------
# Demo / correctness check
# --------------------------------------------------------------------------
if __name__ == "__main__":
    n_z = 96                 # exercises feature-dim padding to 128
    num_classes = 3
    n_components = 4
    E = num_classes * n_components
    N = 37                   # exercises row padding / partial groups

    key = jax.random.PRNGKey(0)
    k_m, k_l, k_logits, k_z, k_y, k_g = jax.random.split(key, 6)

    # Parameters consistent with the module __init__ (m ~ randn, L ~ eye),
    # with a small perturbation on L so the matmul is non-trivial.
    m_all = jax.random.normal(k_m, (E, n_z), dtype=jnp.float32)
    l_all = (jnp.eye(n_z, dtype=jnp.float32)[None, :, :]
             + 0.05 * jax.random.normal(k_l, (E, n_z, n_z), dtype=jnp.float32))
    mixing_logits = 0.1 * jax.random.normal(
        k_logits, (num_classes, n_components), dtype=jnp.float32)

    z = jax.random.normal(k_z, (N, n_z), dtype=jnp.float32)
    y = jax.random.randint(k_y, (N,), 0, num_classes)

    out = gmm_multiclass_forward(z, y, m_all, l_all, mixing_logits, k_g)
    out = jax.block_until_ready(out)

    # Pure-JAX reference with the identical (deterministic) selection.
    expert_ids = sample_component_ids(k_g, y, mixing_logits,
                                      n_components=n_components)
    mask = jax.nn.one_hot(expert_ids, E, dtype=jnp.float32)           # (N, E)
    samps = jnp.einsum("nk,ejk->enj", z, l_all) + m_all[:, None, :]    # (E,N,n_z)
    ref = jnp.einsum("ne,enj->nj", mask, samps)

    assert out.shape == (N, n_z)
    assert jnp.allclose(out, ref, atol=1e-3, rtol=1e-3), "mismatch vs reference"

    print("KERNEL_OK")
</pallas_src>

<mosaic_0001>
module attributes {stable_mosaic.version = 11 : i64} {
  func.func @_gmm_grouped_kernel(%arg0: i32, %arg1: memref<13xi32, #tpu.memory_space<smem>>, %arg2: memref<13xi32, #tpu.memory_space<smem>>, %arg3: memref<128x128xf32, #tpu.memory_space<vmem>>, %arg4: memref<1x128x128xf32, #tpu.memory_space<vmem>>, %arg5: memref<1x1x128xf32, #tpu.memory_space<vmem>>, %arg6: memref<128x128xf32, #tpu.memory_space<vmem>>) attributes {dimension_semantics = [#tpu.dimension_semantics<parallel>], iteration_bounds = array<i64: 13>, scalar_prefetch = 2 : i64, scratch_operands = 0 : i64, tpu.core_type = #tpu.core_type<tc>, window_params = [{transform_indices = @transform_0, window_bounds = array<i64: 128, 128>}, {transform_indices = @transform_1, window_bounds = array<i64: 1, 128, 128>}, {transform_indices = @transform_2, window_bounds = array<i64: 1, 1, 128>}, {transform_indices = @transform_3, window_bounds = array<i64: 128, 128>}]} {
    %0 = arith.index_cast %arg0 : i32 to index
    %1 = memref.load %arg2[%0] : memref<13xi32, #tpu.memory_space<smem>>
    %c0_i32 = arith.constant 0 : i32
    %2 = arith.cmpi sgt, %1, %c0_i32 : i32
    %3 = arith.extui %2 : i1 to i32
    %c0_i32_0 = arith.constant 0 : i32
    %4 = arith.cmpi ne, %3, %c0_i32_0 : i32
    scf.if %4 {
      %c0 = arith.constant 0 : index
      %c0_3 = arith.constant 0 : index
      %10 = vector.load %arg3[%c0, %c0_3] : memref<128x128xf32, #tpu.memory_space<vmem>>, vector<128x128xf32>
      %c0_4 = arith.constant 0 : index
      %c0_5 = arith.constant 0 : index
      %c0_6 = arith.constant 0 : index
      %11 = vector.load %arg4[%c0_4, %c0_5, %c0_6] : memref<1x128x128xf32, #tpu.memory_space<vmem>>, vector<1x128x128xf32>
      %12 = vector.shape_cast %11 : vector<1x128x128xf32> to vector<128x128xf32>
      %cst = arith.constant dense<0.000000e+00> : vector<128x128xf32>
      %13 = tpu.matmul %10, %12, %cst {dimension_numbers = #tpu.dot_dimension_numbers<[1], [1], [0], [0], [0, 0, 1, 0], [], []>} : vector<128x128xf32>, vector<128x128xf32>, vector<128x128xf32> -> vector<128x128xf32>
      %c0_7 = arith.constant 0 : index
      %c0_8 = arith.constant 0 : index
      %c0_9 = arith.constant 0 : index
      %14 = vector.load %arg5[%c0_7, %c0_8, %c0_9] : memref<1x1x128xf32, #tpu.memory_space<vmem>>, vector<1x1x128xf32>
      %15 = vector.shape_cast %14 : vector<1x1x128xf32> to vector<1x128xf32>
      %16 = vector.broadcast %15 : vector<1x128xf32> to vector<128x128xf32>
      %17 = arith.addf %13, %16 : vector<128x128xf32>
      %c0_10 = arith.constant 0 : index
      %c0_11 = arith.constant 0 : index
      %18 = vector.load %arg6[%c0_10, %c0_11] : memref<128x128xf32, #tpu.memory_space<vmem>>, vector<128x128xf32>
      tpu.vector_store %arg6[%c0_10, %c0_11], %17 {strides = array<i32>} : memref<128x128xf32, #tpu.memory_space<vmem>>, vector<128x128xf32>,
    } else {
    }
    %5 = arith.index_cast %arg0 : i32 to index
    %6 = memref.load %arg2[%5] : memref<13xi32, #tpu.memory_space<smem>>
    %c0_i32_1 = arith.constant 0 : i32
    %7 = arith.cmpi eq, %6, %c0_i32_1 : i32
    %8 = arith.extui %7 : i1 to i32
    %c0_i32_2 = arith.constant 0 : i32
    %9 = arith.cmpi ne, %8, %c0_i32_2 : i32
    scf.if %9 {
      %cst = arith.constant 0.000000e+00 : f32
      %10 = vector.broadcast %cst : f32 to vector<128x128xf32>
      %c0 = arith.constant 0 : index
      %c0_3 = arith.constant 0 : index
      %11 = vector.load %arg6[%c0, %c0_3] : memref<128x128xf32, #tpu.memory_space<vmem>>, vector<128x128xf32>
      tpu.vector_store %arg6[%c0, %c0_3], %10 {strides = array<i32>} : memref<128x128xf32, #tpu.memory_space<vmem>>, vector<128x128xf32>,
    } else {
    }
    return
  }
  func.func @transform_0(%arg0: i32, %arg1: memref<13xi32, #tpu.memory_space<smem>>, %arg2: memref<13xi32, #tpu.memory_space<smem>>) -> (i32, i32) {
    %c0_i32 = arith.constant 0 : i32
    %c0_i32_0 = arith.constant 0 : i32
    return %arg0, %c0_i32 : i32, i32
  }
  func.func @transform_1(%arg0: i32, %arg1: memref<13xi32, #tpu.memory_space<smem>>, %arg2: memref<13xi32, #tpu.memory_space<smem>>) -> (i32, i32, i32) {
    %0 = arith.index_cast %arg0 : i32 to index
    %1 = memref.load %arg1[%0] : memref<13xi32, #tpu.memory_space<smem>>
    %c0_i32 = arith.constant 0 : i32
    %c0_i32_0 = arith.constant 0 : i32
    %c0_i32_1 = arith.constant 0 : i32
    return %1, %c0_i32, %c0_i32_0 : i32, i32, i32
  }
  func.func @transform_2(%arg0: i32, %arg1: memref<13xi32, #tpu.memory_space<smem>>, %arg2: memref<13xi32, #tpu.memory_space<smem>>) -> (i32, i32, i32) {
    %0 = arith.index_cast %arg0 : i32 to index
    %1 = memref.load %arg1[%0] : memref<13xi32, #tpu.memory_space<smem>>
    %c0_i32 = arith.constant 0 : i32
    %c0_i32_0 = arith.constant 0 : i32
    %c0_i32_1 = arith.constant 0 : i32
    return %1, %c0_i32, %c0_i32_0 : i32, i32, i32
  }
  func.func @transform_3(%arg0: i32, %arg1: memref<13xi32, #tpu.memory_space<smem>>, %arg2: memref<13xi32, #tpu.memory_space<smem>>) -> (i32, i32) {
    %c0_i32 = arith.constant 0 : i32
    %c0_i32_0 = arith.constant 0 : i32
    return %arg0, %c0_i32 : i32, i32
  }
}

</mosaic_0001>

<bundles_post_ra>
// kernel: tpu_custom_call.1
= control target key start
LH: loop header
LB: loop body
LE: loop exit
PB: predicated region body
PF: predicated region fallthrough
CT: control target
= control target key end

     0   :  { %s1454_s0 = inlined_call_operand.hbm [shape: s32[13], index: 0, kind: input, shape index: {}]   ;;  %s1455_s2 = inlined_call_operand.hbm [shape: f32[1664,128], index: 2, kind: input, shape index: {}]   ;;  %s1456_s3 = inlined_call_operand.hbm [shape: f32[12,128,128], index: 3, kind: input, shape index: {}]   ;;  %s1457_s4 = inlined_call_operand.vmem [shape: f32[12,1,128], index: 4, kind: input, shape index: {}]   ;;  %s1458_s5 = inlined_call_operand.hbm [shape: f32[1664,128], index: 5, kind: output, shape index: {}]   ;;  %s1459_s1 = inlined_call_operand.vmem [shape: s32[13], index: 1, kind: input, shape index: {}]  }
   0x1   :  { %1468 = sst [smem:[#allocation18_spill]] %s1455_s2  ;;  %s857_s20 = scalar_lea.hbm %s1454_s0, 16 }
   0x2   :  { %p858_p0 = scmp.ne.s32.totalorder %s1454_s0, %s857_s20  ;;  %p861_p1 = scmp.lt.u32.totalorder %s857_s20, %s1454_s0 }
   0x4   :  { %p863_p2 = pnand %p861_p1, %p858_p0 }
   0x6   :  { %866 = shalt.err (!%p863_p2)  }
   0x7   :  { %s1037_s25 = smov [#allocation3]   ;;  %s12_s30 = sshll.u32 %s1459_s1, 4  ;;  %s13_s30 = int_to_ptr.vmem [resolvable:$true] %s12_s30 }
   0x8   :  { %11 = dma.hbm_to_smem %s1454_s0, 16, %s1037_s25, [#allocation2] }
   0x9   :  { %s867_s6 = scalar_lea.vmem %s13_s30, 16  ;;  %p872_p4 = scmp.lt.s32.totalorder %s13_s30, %s13_s30 }
   0xa   :  { %p868_p3 = scmp.ne.s32.totalorder %s13_s30, %s867_s6  ;;  %p873_p5 = scmp.lt.s32.totalorder %s867_s6, %s867_s6 }
   0xc   :  { %p874_p6 = por %p873_p5, %p872_p4 }
   0xe   :  { %p875_p7 = pnand %p874_p6, %p868_p3 }
  0x10   :  { %878 = shalt.err (!%p875_p7)  }
  0x11   :  { %s1038_s7 = smov [#allocation4]  }
  0x12   :  { %15 = dma.vmem_to_smem %s13_s30, 16, %s1038_s7, [#allocation2] }
  0x13   :  { %995 = dma.done.wait [#allocation2], 32 }
  0x14   :  { %996 = vsyncadd [#allocation2], 4294967264 }
  0x15   :  { %17 = sfence }
  0x16   :  { %18 = vsyncpa [#allocation6], 0 }
  0x17   :  { %20 = vsyncpa [#allocation6 + $0x1], 0 }
  0x18   :  { %21 = vsyncpa [#allocation9], 0 }
  0x19   :  { %23 = vsyncpa [#allocation9 + $0x1], 0 }
  0x1a   :  { %24 = vsyncpa [#allocation7], 0 }
  0x1b   :  { %26 = vsyncpa [#allocation7 + $0x1], 0  ;;  %s1092_s0 = smov 0   ;;  %s1094_s1 = smov 0  }
  0x1c   :  { %s1096_s8 = smov 0   ;;  %s1098_s9 = smov 0  }
  0x1d   :  { %s1100_s10 = smov 0   ;;  %s1102_s11 = smov 0  }
  0x1e   :  { %s1104_s12 = smov 0  }
  0x1f LB: > { %s1128_s13 = sadd.s32 4294967295, %s1035_s12   ;;  %s611_s14 = sadd.s32 4294967294, %s1035_s12   ;;  %s1035_s12 = sphi %s1104_s12, %s1498_s12   ;;  %s1031_s11 = sphi %s1102_s11, %s1497_s11   ;;  %s1027_s10 = sphi %s1100_s10, %s1496_s10   ;;  %s1023_s9 = sphi %s1098_s9, %s1495_s9   ;;  %s1019_s8 = sphi %s1096_s8, %s1494_s8   ;;  %s1015_s1 = sphi %s1094_s1, %s1493_s1   ;;  %s1011_s0 = sphi %s1092_s0, %s1492_s0  }
  0x20   : > { %s1132_s15 = sadd.s32 1, %s1035_s12   ;;  %s39_s16 = sadd.s32 1, %s1031_s11 }
  0x21   : > { %s36_s17 = ssub.s32 %s1035_s12, %s1132_s15  ;;  %p46_p8 = scmp.ne.s32.totalorder %s1031_s11, %s1027_s10 }
  0x22   : > { %p37_p9 = scmp.eq.s32.totalorder %s36_s17, 0  ;;  %p1461_p10 = scmp.eq.s32.totalorder %s1035_s12, 0 }
  0x23   : > { %p52_p11 = scmp.ne.s32.totalorder %s1027_s10, %s1023_s9  ;;  %p1462_p12 = scmp.eq.s32.totalorder %s1128_s13, 0 }
  0x24   : > { %s1144_s18 = scalar_select %p37_p9, %s1031_s11, %s39_s16  }
  0x25   : > { %p1148_p13 = por %p1461_p10, %p46_p8  ;;  %p1154_p0 = por %p1462_p12, %p52_p11 }
  0x26   : > { %1469 = sst [smem:[#allocation17_spill]] %s1144_s18  ;;  %p132_p1 = scmp.eq.s32.totalorder %s1128_s13, 12 }
  0x27   : > { %s1471_s20 = scalar_select %p1154_p0, 1, 0 }
  0x28   : > { %s1159_s21 = sld [smem:[#allocation3 + %s1132_s15]]  ;;  %p138_p2 = scmp.eq.s32.totalorder %s611_s14, 12 }
  0x29   : > { %p1162_p3 = por %p132_p1, %p46_p8  ;;  %p1460_p4 = scmp.lt.s32.totalorder %s1035_s12, 13 }
  0x2a   : > { %p1167_p5 = por %p138_p2, %p52_p11  ;;  %s158_s24 = sand.u32 1, %s1031_s11  }
  0x2b   : > { %s1472_s22 = scalar_select %p1162_p3, 1, 0 }
  0x2c   : > { %s1473_s23 = scalar_select %p1167_p5, 1, 0 }
  0x2d   : > { %s614_s25 = sshll.u32 %s158_s24, 7  ;;  %s632_s26 = sshll.u32 %s1035_s12, 11 }
  0x2e   : > { %s1474_s2 = sld [smem:[#allocation18_spill]]  ;;  %s162_s30 = scalar_lea.vmem [#allocation5], %s614_s25 }
  0x2f   : > { %s169_s6 = sshll.u32 %s162_s30, 4  ;;  %p1184_p6 = pnand %p1460_p4, %p1148_p13  ;;  %s1178_s6 = int_to_ptr.vmem [resolvable:$true] %s169_s6 }
  0x30   : > { %s1189_s14 = scalar_lea.sflag [#allocation6], %s158_s24 }
  0x31   : > { %p881_p9 = pneg %p1184_p6 }
  0x34   : > { %s1176_s29 = scalar_lea.hbm %s1474_s2, %s632_s26  ;;  %s884_s25 = scalar_lea.hbm %s1474_s2, 26624 }
  0x35   : > { %s879_s16 = scalar_lea.hbm %s1176_s29, 2048  ;;  %p885_p13 = scmp.lt.u32.totalorder %s1176_s29, %s1474_s2 }
  0x36   : > { %p880_p8 = scmp.ne.s32.totalorder %s1176_s29, %s879_s16  ;;  %p886_p2 = scmp.lt.u32.totalorder %s884_s25, %s879_s16 }
  0x37   : > { %p888_p10 = scmp.lt.u32.totalorder %s879_s16, %s1176_s29 }
  0x38   : > { %p882_p11 = pnand %p881_p9, %p880_p8  ;;  %p887_p4 = por %p886_p2, %p885_p13 }
  0x3a   : > { %p883_p1 = pneg %p882_p11  ;;  %p889_p12 = por %p888_p10, %p887_p4 }
  0x3c   : > { %p890_p7 = pnand %p889_p12, %p883_p1 }
  0x3e   : > { %893 = shalt.err (!%p890_p7)
}
  0x3f   : > { %s894_s24 = scalar_lea.vmem %s1178_s6, 2048  ;;  %s1039_s28 = smov [#allocation5]  }
  0x40   : > { %p895_p8 = scmp.ne.s32.totalorder %s1178_s6, %s894_s24  ;;  %s899_s30 = sshll.u32 %s1039_s28, 4  ;;  %s900_s30 = int_to_ptr.vmem [resolvable:$false] %s899_s30 }
  0x41   : > { %s901_s17 = scalar_lea.vmem %s900_s30, 4096  ;;  %p902_p3 = scmp.lt.s32.totalorder %s1178_s6, %s900_s30 }
  0x42   : > { %p897_p11 = pnand %p895_p8, %p881_p9  ;;  %p903_p13 = scmp.lt.s32.totalorder %s901_s17, %s894_s24 }
  0x44   : > { %p898_p5 = pneg %p897_p11  ;;  %p904_p2 = por %p903_p13, %p902_p3 }
  0x46   : > { %p905_p10 = pnand %p904_p2, %p898_p5 }
  0x48   : > { %908 = shalt.err (!%p905_p10)
}
  0x49   : > { %s1464_s16 = smov 128   ;;  %s1465_s19 = smov 8  }
  0x4a   : > { %782 = dma.hbm_to_vmem [thread:$0]  (!%p1184_p6), %s1176_s29, 2048, %s1178_s6, %s1189_s14, %s1464_s16, %s1464_s16, %s1465_s19  }
  0x4b   : > { %p207_p12 = scmp.lt.s32.totalorder %s1035_s12, 14  ;;  %p1476_p3 = scmp.ge.s32.totalorder %s1035_s12, 1 }
  0x4c   : > { %s62_s26 = sld [smem:[#allocation3 + %s1035_s12]]  ;;  %p74_p5 = scmp.ne.s32.totalorder %s1019_s8, %s1015_s1 }
  0x4d   : > { %p1223_p4 = pnand %p1476_p3, %p207_p12  ;;  %p80_p7 = scmp.ne.s32.totalorder %s1015_s1, %s1011_s0 }
  0x4e   : > { %p1478_p9 = scmp.eq.s32.totalorder %s1128_s13, 0  ;;  %s179_s27 = sand.u32 1, %s1019_s8  }
  0x4f   : > { %p1480_p8 = scmp.eq.s32.totalorder %s1035_s12, 0  ;;  %s67_s29 = sadd.s32 1, %s1019_s8 }
  0x50   : > { %p1234_p1 = por %p80_p7, %p1478_p9  ;;  %s617_s14 = sshll.u32 %s179_s27, 7 }
  0x51   : > { %p76_p6 = por %p74_p5, %p1480_p8  ;;  %p1481_p13 = scmp.lt.s32.totalorder %s1035_s12, 13 }
  0x52   : > { %s1479_s7 = scalar_select %p1234_p1, 1, 0 }
  0x53   : > { %s64_s6 = ssub.s32 %s62_s26, %s1159_s21  ;;  %p1245_p2 = pnand %p1481_p13, %p76_p6 }
  0x54   : > { %p65_p11 = scmp.eq.s32.totalorder %s64_s6, 0  ;;  %p1483_p10 = pmov %p1481_p13 }
  0x55   : > { %s772_s0 = scalar_select %p76_p6, [#allocation3], [#allocation11] }
  0x56   : > { %s1250_s28 = scalar_select %p65_p11, %s1019_s8, %s67_s29  }
  0x57   : > { %s773_s30 = scalar_select %p76_p6, %s1035_s12, 0 }
  0x58   : > { %s1500_s0 = smov (!%p1483_p10, %s772_s0), [#allocation12]  ;;  %p1484_p12 = pmov %p1483_p10 }
  0x59   : > { %s183_s16 = scalar_lea.vmem [#allocation8], %s617_s14  ;;  %s1264_s29 = scalar_lea.sflag [#allocation9], %s179_s27 }
  0x5a   : > { %s1502_s30 = smov (!%p1484_p12, %s773_s30), 0  ;;  %s191_s21 = sshll.u32 %s183_s16, 4  ;;  %s1257_s21 = int_to_ptr.vmem [resolvable:$true] %s191_s21 }
  0x5b   : > { %s184_s17 = sld [smem:[%s1500_s0 + %s1502_s30]]  ;;  %p911_p5 = pneg %p1245_p2 }
  0x5c   : > { %s914_s19 = scalar_lea.hbm %s1456_s3, 24576 }
  0x61   : > { %s633_s26 = sshll.u32 %s184_s17, 11 }
  0x62   : > { %s1262_s2 = scalar_lea.hbm %s1456_s3, %s633_s26 }
  0x63   : > { %s909_s18 = scalar_lea.hbm %s1262_s2, 2048  ;;  %p915_p8 = scmp.lt.u32.totalorder %s1262_s2, %s1456_s3 }
  0x64   : > { %p910_p3 = scmp.ne.s32.totalorder %s1262_s2, %s909_s18  ;;  %p916_p6 = scmp.lt.u32.totalorder %s914_s19, %s909_s18 }
  0x65   : > { %p918_p13 = scmp.lt.u32.totalorder %s909_s18, %s1262_s2 }
  0x66   : > { %p912_p7 = pnand %p911_p5, %p910_p3  ;;  %p917_p11 = por %p916_p6, %p915_p8 }
  0x68   : > { %p913_p9 = pneg %p912_p7  ;;  %p919_p10 = por %p918_p13, %p917_p11 }
  0x6a   : > { %p920_p12 = pnand %p919_p10, %p913_p9 }
  0x6c   : > { %923 = shalt.err (!%p920_p12)
}
  0x6d   : > { %s924_s27 = scalar_lea.vmem %s1257_s21, 2048  ;;  %s1042_s17 = smov [#allocation8]  }
  0x6e   : > { %p925_p3 = scmp.ne.s32.totalorder %s1257_s21, %s924_s27  ;;  %s929_s26 = sshll.u32 %s1042_s17, 4  ;;  %s930_s26 = int_to_ptr.vmem [resolvable:$false] %s929_s26 }
  0x6f   : > { %s931_s6 = scalar_lea.vmem %s930_s26, 4096  ;;  %p932_p0 = scmp.lt.s32.totalorder %s1257_s21, %s930_s26 }
  0x70   : > { %p927_p7 = pnand %p925_p3, %p911_p5  ;;  %p933_p8 = scmp.lt.s32.totalorder %s931_s6, %s924_s27 }
  0x72   : > { %p928_p1 = pneg %p927_p7  ;;  %p934_p6 = por %p933_p8, %p932_p0 }
  0x74   : > { %p935_p11 = pnand %p934_p6, %p928_p1 }
  0x76   : > { %938 = shalt.err (!%p935_p11)
}
  0x77   : > { %s1485_s18 = smov 8   ;;  %s1486_s16 = smov 128  }
  0x78   : > { %787 = dma.hbm_to_vmem [thread:$0]  (!%p1245_p2), %s1262_s2, 2048, %s1257_s21, %s1264_s29, %s1486_s16, %s1486_s16, %s1485_s18  }
  0x79   : > { %211 = sbr.rel (%p1223_p4) target bundleno = 478 (0x1de), region = 32  ;;  %s1298_s14 = sand.u32 (!%p1223_p4), 1, %s1027_s10  }
  0x7a   : > { %s621_s19 = sshll.u32 (!%p1223_p4), %s1298_s14, 7  ;;  %s214_s0 = scalar_lea.sflag (!%p1223_p4), [#allocation6], %s1298_s14 }
  0x7b   : > { %s1302_s30 = scalar_lea.vmem (!%p1223_p4), [#allocation5], %s621_s19  ;;  %p1487_p0 = scmp.ne.s32.totalorder (!%p1223_p4), %s1471_s20, 0 }
  0x80   : > { %998 = dma.done.wait (%p1487_p0), %s214_s0, 2048  }
  0x81   : > { %1000 = vsyncadd (%p1487_p0), %s214_s0, 4294965248  ;;  %s222_s2 = sand.u32 1, %s1015_s1   ;;  %p1488_p4 = scmp.ne.s32.totalorder %s1479_s7, 0 }
  0x82   : > { %s622_s25 = sshll.u32 %s222_s2, 7  ;;  %s223_s24 = scalar_lea.sflag [#allocation9], %s222_s2 }
  0x83   : > { %s1309_s21 = scalar_lea.vmem [#allocation8], %s622_s25 }
  0x84   : > { %1002 = dma.done.wait (%p1488_p4), %s223_s24, 2048  }
  0x85   : > { %1004 = vsyncadd (%p1488_p4), %s223_s24, 4294965248  ;;  %s260_s29 = sld [smem:[#allocation3 + %s1128_s13]]  ;;  %s1323_s6 = scalar_lea.vmem [#allocation10], %s621_s19 }
  0x86   : > { %s266_s27 = sld [smem:[#allocation4 + %s1128_s13]] }
  0x8b   : > { %p261_p1 = scmp.lt.s32.totalorder %s260_s29, 11 }
  0x8c   : > { %p624_p2 = scmp.le.s32.totalorder %s266_s27, 0 }
  0x8d   : > { %s1504_s29 = smov (!%p261_p1, %s260_s29), 11  ;;  %v287_v0 = vld [vmem:[%s1309_s21] sm:$0xff] (!%p624_p2)  ;;  %v288_v1 = vld [vmem:[%s1309_s21 + $0x8] sm:$0xff] (!%p624_p2)  ;;  %v289_v2 = vld [vmem:[%s1309_s21 + $0x10] sm:$0xff] (!%p624_p2) }
  0x8e   : > { %s263_s26 = scalar_lea.vmem %s1457_s4, %s1504_s29  ;;  %270 = sbr.rel (%p624_p2) target bundleno = 436 (0x1b4), region = 44  ;;  %v723_v3 = vpack.c.bf16 (!%p624_p2), %v288_v1, %v287_v0  ;;  %v290_v4 = vld [vmem:[%s1309_s21 + $0x18] sm:$0xff] (!%p624_p2)  ;;  %v271_v6 = vld [vmem:[%s1302_s30] sm:$0xff] (!%p624_p2)  ;;  %v292_v9 = vld [vmem:[%s1309_s21 + $0x28] sm:$0xff] (!%p624_p2) }
  0x8f   : > { %v727_v5 = vpack.c.bf16 (!%p624_p2), %v290_v4, %v289_v2  ;;  %v279_v7 = vld [vmem:[%s1302_s30 + $0x40] sm:$0xff] (!%p624_p2)  ;;  %699 = vmatprep.mubr.f32.mxu0 (!%p624_p2), %v271_v6  ;;  %v293_v11 = vld [vmem:[%s1309_s21 + $0x30] sm:$0xff] (!%p624_p2)  ;;  %v294_v12 = vld [vmem:[%s1309_s21 + $0x38] sm:$0xff] (!%p624_p2) }
  0x90   : > { %724 = vmatprep.subr.bf16.mxu0 (!%p624_p2), %v723_v3  ;;  %755 = vmatprep.subr.bf16.mxu1 (!%p624_p2), %v723_v3  ;;  %v291_v8 = vld [vmem:[%s1309_s21 + $0x20] sm:$0xff] (!%p624_p2)  ;;  %v735_v13 = vpack.c.bf16 (!%p624_p2), %v294_v12, %v293_v11  ;;  %v296_v15 = vld [vmem:[%s1309_s21 + $0x48] sm:$0xff] (!%p624_p2)  ;;  %v297_v17 = vld [vmem:[%s1309_s21 + $0x50] sm:$0xff] (!%p624_p2) }
  0x91   : > { %726 = vmatpush3.bf16.xpose.msra.mxu0 (!%p624_p2), %v723_v3  ;;  %763 = vmatpush3.bf16.xpose.msra.mxu1 (!%p624_p2), %v723_v3  ;;  %v731_v10 = vpack.c.bf16 (!%p624_p2), %v292_v9, %v291_v8  ;;  %v295_v14 = vld [vmem:[%s1309_s21 + $0x40] sm:$0xff] (!%p624_p2)  ;;  %v298_v18 = vld [vmem:[%s1309_s21 + $0x58] sm:$0xff] (!%p624_p2)  ;;  %v300_v21 = vld [vmem:[%s1309_s21 + $0x68] sm:$0xff] (!%p624_p2) }
  0x92   : > { %728 = vmatprep.subr.bf16.mxu0 (!%p624_p2), %v727_v5  ;;  %756 = vmatprep.subr.bf16.mxu1 (!%p624_p2), %v727_v5  ;;  %v739_v16 = vpack.c.bf16 (!%p624_p2), %v296_v15, %v295_v14  ;;  %v743_v19 = vpack.c.bf16 (!%p624_p2), %v298_v18, %v297_v17  ;;  %v299_v20 = vld [vmem:[%s1309_s21 + $0x60] sm:$0xff] (!%p624_p2)  ;;  %v301_v23 = vld [vmem:[%s1309_s21 + $0x70] sm:$0xff] (!%p624_p2)  ;;  %v302_v24 = vld [vmem:[%s1309_s21 + $0x78] sm:$0xff] (!%p624_p2) }
  0x93   : > { %711 = vmatprep.mubr.f32.mxu1 (!%p624_p2), %v279_v7  ;;  %v747_v22 = vpack.c.bf16 (!%p624_p2), %v300_v21, %v299_v20  ;;  %v751_v25 = vpack.c.bf16 (!%p624_p2), %v302_v24, %v301_v23  ;;  %v272_v26 = vld [vmem:[%s1302_s30 + $0x8] sm:$0xff] (!%p624_p2)  ;;  %v273_v28 = vld [vmem:[%s1302_s30 + $0x10] sm:$0xff] (!%p624_p2)  ;;  %v274_v30 = vld [vmem:[%s1302_s30 + $0x18] sm:$0xff] (!%p624_p2) }
  0x94   : > { %v280_v27 = vld [vmem:[%s1302_s30 + $0x48] sm:$0xff] (!%p624_p2)  ;;  %v281_v29 = vld [vmem:[%s1302_s30 + $0x50] sm:$0xff] (!%p624_p2)  ;;  %v282_v31 = vld [vmem:[%s1302_s30 + $0x58] sm:$0xff] (!%p624_p2) }
  0x95   : > { %v275_v32 = vld [vmem:[%s1302_s30 + $0x20] sm:$0xff]  ;;  %v276_v34 = vld [vmem:[%s1302_s30 + $0x28] sm:$0xff]  ;;  %v277_v36 = vld [vmem:[%s1302_s30 + $0x30] sm:$0xff] }
  0x96   : > { %v283_v33 = vld [vmem:[%s1302_s30 + $0x60] sm:$0xff]  ;;  %v284_v35 = vld [vmem:[%s1302_s30 + $0x68] sm:$0xff]  ;;  %v285_v37 = vld [vmem:[%s1302_s30 + $0x70] sm:$0xff] }
  0x97   : > { %v278_v38 = vld [vmem:[%s1302_s30 + $0x38] sm:$0xff]  ;;  %v625_v40 = vld [vmem:[%s263_s26] ss:$0 sm:$0xff] }
  0x98   : > { %v286_v39 = vld [vmem:[%s1302_s30 + $0x78] sm:$0xff] }
  0x99   : > { %730 = vmatpush3.bf16.xpose.msra.mxu0 %v727_v5  ;;  %764 = vmatpush3.bf16.xpose.msra.mxu1 %v727_v5 }
  0x9a   : > { %732 = vmatprep.subr.bf16.mxu0 %v731_v10  ;;  %757 = vmatprep.subr.bf16.mxu1 %v731_v10 }
  0xa1   : > { %734 = vmatpush3.bf16.xpose.msra.mxu0 %v731_v10  ;;  %765 = vmatpush3.bf16.xpose.msra.mxu1 %v731_v10 }
  0xa2   : > { %736 = vmatprep.subr.bf16.mxu0 %v735_v13  ;;  %758 = vmatprep.subr.bf16.mxu1 %v735_v13 }
  0xa9   : > { %738 = vmatpush3.bf16.xpose.msra.mxu0 %v735_v13  ;;  %766 = vmatpush3.bf16.xpose.msra.mxu1 %v735_v13 }
  0xaa   : > { %740 = vmatprep.subr.bf16.mxu0 %v739_v16  ;;  %759 = vmatprep.subr.bf16.mxu1 %v739_v16 }
  0xb1   : > { %742 = vmatpush3.bf16.xpose.msra.mxu0 %v739_v16  ;;  %767 = vmatpush3.bf16.xpose.msra.mxu1 %v739_v16 }
  0xb2   : > { %744 = vmatprep.subr.bf16.mxu0 %v743_v19  ;;  %760 = vmatprep.subr.bf16.mxu1 %v743_v19 }
  0xb9   : > { %746 = vmatpush3.bf16.xpose.msra.mxu0 %v743_v19  ;;  %768 = vmatpush3.bf16.xpose.msra.mxu1 %v743_v19 }
  0xba   : > { %748 = vmatprep.subr.bf16.mxu0 %v747_v22  ;;  %761 = vmatprep.subr.bf16.mxu1 %v747_v22 }
  0xc1   : > { %750 = vmatpush3.bf16.xpose.msra.mxu0 %v747_v22  ;;  %769 = vmatpush3.bf16.xpose.msra.mxu1 %v747_v22 }
  0xc2   : > { %752 = vmatprep.subr.bf16.mxu0 %v751_v25  ;;  %762 = vmatprep.subr.bf16.mxu1 %v751_v25 }
  0xc9   : > { %754 = vmatpush3.bf16.xpose.msra.mxu0 %v751_v25  ;;  %770 = vmatpush3.bf16.xpose.msra.mxu1 %v751_v25 }
  0xd0   : > { %700 = vmatmul.mubr.f32.vlgmr.msra.gmra.mrb[0].mxu0 %v272_v26  ;;  %712 = vmatmul.mubr.f32.vlgmr.msra.gmra.mrb[0].mxu1 %v280_v27 }
  0xd1   : > { %702 = vmatprep.mubr.f32.mxu0 %v273_v28  ;;  %714 = vmatprep.mubr.f32.mxu1 %v281_v29 }
  0xd4   : > { %703 = vmatmul.mubr.f32.gmra.mrb[2].mxu0 %v274_v30  ;;  %715 = vmatmul.mubr.f32.gmra.mrb[2].mxu1 %v282_v31 }
  0xd5   : > { %705 = vmatprep.mubr.f32.mxu0 %v275_v32  ;;  %717 = vmatprep.mubr.f32.mxu1 %v283_v33 }
  0xd8   : > { %706 = vmatmul.mubr.f32.gmra.mrb[4].mxu0 %v276_v34  ;;  %718 = vmatmul.mubr.f32.gmra.mrb[4].mxu1 %v284_v35 }
  0xd9   : > { %708 = vmatprep.mubr.f32.mxu0 %v277_v36  ;;  %720 = vmatprep.mubr.f32.mxu1 %v285_v37 }
  0xdc   : > { %709 = vmatmul.mubr.f32.gmra.mrb[6].mxu0 %v278_v38  ;;  %721 = vmatmul.mubr.f32.gmra.mrb[6].mxu1 %v286_v39 }
 0x1a3   : > { %v701_v41 = vpop.f32.mrb[0].mxu0  ;;  %v713_v42 = vpop.f32.mrb[0].mxu1 }
 0x1a4   : > { %v382_v43 = vadd.f32 %v701_v41, %v625_v40  ;;  %v422_v44 = vadd.f32 %v713_v42, %v625_v40  ;;  %v376_v45 = vpop.f32.mrb[1].mxu0  ;;  %v416_v46 = vpop.f32.mrb[1].mxu1 }
 0x1a5   : > { %v377_v47 = vadd.f32 %v625_v40, %v376_v45  ;;  %v417_v48 = vadd.f32 %v625_v40, %v416_v46 }
 0x1a6   : > { %456 = vst [vmem:[%s1323_s6 + $0x8] sm:$0xff] %v382_v43  ;;  %464 = vst [vmem:[%s1323_s6 + $0x48] sm:$0xff] %v422_v44 }
 0x1a7   : > { %455 = vst [vmem:[%s1323_s6] sm:$0xff] %v377_v47  ;;  %463 = vst [vmem:[%s1323_s6 + $0x40] sm:$0xff] %v417_v48  ;;  %v704_v49 = vpop.f32.mrb[2].mxu0  ;;  %v716_v50 = vpop.f32.mrb[2].mxu1 }
 0x1a8   : > { %v392_v51 = vadd.f32 %v704_v49, %v625_v40  ;;  %v432_v52 = vadd.f32 %v716_v50, %v625_v40  ;;  %v386_v53 = vpop.f32.mrb[3].mxu0  ;;  %v426_v54 = vpop.f32.mrb[3].mxu1 }
 0x1a9   : > { %v387_v55 = vadd.f32 %v625_v40, %v386_v53  ;;  %v427_v56 = vadd.f32 %v625_v40, %v426_v54 }
 0x1aa   : > { %458 = vst [vmem:[%s1323_s6 + $0x18] sm:$0xff] %v392_v51  ;;  %466 = vst [vmem:[%s1323_s6 + $0x58] sm:$0xff] %v432_v52 }
 0x1ab   : > { %457 = vst [vmem:[%s1323_s6 + $0x10] sm:$0xff] %v387_v55  ;;  %465 = vst [vmem:[%s1323_s6 + $0x50] sm:$0xff] %v427_v56  ;;  %v707_v57 = vpop.f32.mrb[4].mxu0  ;;  %v719_v58 = vpop.f32.mrb[4].mxu1 }
 0x1ac   : > { %v402_v59 = vadd.f32 %v707_v57, %v625_v40  ;;  %v442_v60 = vadd.f32 %v719_v58, %v625_v40  ;;  %v396_v61 = vpop.f32.mrb[5].mxu0  ;;  %v436_v62 = vpop.f32.mrb[5].mxu1 }
 0x1ad   : > { %v397_v63 = vadd.f32 %v625_v40, %v396_v61  ;;  %v437_v0 = vadd.f32 %v625_v40, %v436_v62 }
 0x1ae   : > { %460 = vst [vmem:[%s1323_s6 + $0x28] sm:$0xff] %v402_v59  ;;  %468 = vst [vmem:[%s1323_s6 + $0x68] sm:$0xff] %v442_v60 }
 0x1af   : > { %459 = vst [vmem:[%s1323_s6 + $0x20] sm:$0xff] %v397_v63  ;;  %467 = vst [vmem:[%s1323_s6 + $0x60] sm:$0xff] %v437_v0  ;;  %v710_v1 = vpop.f32.mrb[6].mxu0  ;;  %v722_v2 = vpop.f32.mrb[6].mxu1 }
 0x1b0   : > { %v412_v3 = vadd.f32 %v710_v1, %v625_v40  ;;  %v452_v4 = vadd.f32 %v722_v2, %v625_v40  ;;  %v406_v5 = vpop.f32.mrb[7].mxu0  ;;  %v446_v6 = vpop.f32.mrb[7].mxu1 }
 0x1b1   : > { %v407_v7 = vadd.f32 %v625_v40, %v406_v5  ;;  %v447_v8 = vadd.f32 %v625_v40, %v446_v6 }
 0x1b2   : > { %462 = vst [vmem:[%s1323_s6 + $0x38] sm:$0xff] %v412_v3  ;;  %470 = vst [vmem:[%s1323_s6 + $0x78] sm:$0xff] %v452_v4 }
 0x1b3   : > { %461 = vst [vmem:[%s1323_s6 + $0x30] sm:$0xff] %v407_v7  ;;  %469 = vst [vmem:[%s1323_s6 + $0x70] sm:$0xff] %v447_v8 }
 0x1b4 PF: > { %s471_s16 = sld [smem:[#allocation4 + %s1128_s13]] }
 0x1ba   : > { %p626_p5 = scmp.ne.s32.totalorder %s471_s16, 0 }
 0x1bb   : > { %v1043_v9 = vmov (!%p626_p5), 0.0  }
 0x1bc   : > { %475 = sbr.rel (%p626_p5) target bundleno = 452 (0x1c4), region = 48  ;;  %476 = vst [vmem:[%s1323_s6] sm:$0xff] (!%p626_p5), %v1043_v9  ;;  %477 = vst [vmem:[%s1323_s6 + $0x8] sm:$0xff] (!%p626_p5), %v1043_v9 }
 0x1bd   : > { %478 = vst [vmem:[%s1323_s6 + $0x10] sm:$0xff] (!%p626_p5), %v1043_v9  ;;  %479 = vst [vmem:[%s1323_s6 + $0x18] sm:$0xff] (!%p626_p5), %v1043_v9 }
 0x1be   : > { %480 = vst [vmem:[%s1323_s6 + $0x20] sm:$0xff] (!%p626_p5), %v1043_v9  ;;  %481 = vst [vmem:[%s1323_s6 + $0x28] sm:$0xff] (!%p626_p5), %v1043_v9 }
 0x1bf   : > { %482 = vst [vmem:[%s1323_s6 + $0x30] sm:$0xff] (!%p626_p5), %v1043_v9  ;;  %483 = vst [vmem:[%s1323_s6 + $0x38] sm:$0xff] (!%p626_p5), %v1043_v9 }
 0x1c0   : > { %484 = vst [vmem:[%s1323_s6 + $0x40] sm:$0xff] (!%p626_p5), %v1043_v9  ;;  %485 = vst [vmem:[%s1323_s6 + $0x48] sm:$0xff] (!%p626_p5), %v1043_v9 }
 0x1c1   : > { %486 = vst [vmem:[%s1323_s6 + $0x50] sm:$0xff] (!%p626_p5), %v1043_v9  ;;  %487 = vst [vmem:[%s1323_s6 + $0x58] sm:$0xff] (!%p626_p5), %v1043_v9 }
 0x1c2   : > { %488 = vst [vmem:[%s1323_s6 + $0x60] sm:$0xff] (!%p626_p5), %v1043_v9  ;;  %489 = vst [vmem:[%s1323_s6 + $0x68] sm:$0xff] (!%p626_p5), %v1043_v9 }
 0x1c3   : > { %490 = vst [vmem:[%s1323_s6 + $0x70] sm:$0xff] %v1043_v9  ;;  %491 = vst [vmem:[%s1323_s6 + $0x78] sm:$0xff] %v1043_v9 }
 0x1c4 PF: > { %s634_s19 = sshll.u32 %s1128_s13, 11  ;;  %s506_s25 = sshll.u32 %s1323_s6, 4  ;;  %s1402_s25 = int_to_ptr.vmem [resolvable:$true] %s506_s25 }
 0x1c5   : > { %s1399_s2 = scalar_lea.hbm %s1458_s5, %s634_s19  ;;  %s493_s24 = scalar_lea.sflag [#allocation7], %s1298_s14 }
 0x1c6   : > { %s939_s21 = scalar_lea.vmem %s1402_s25, 2048  ;;  %p1489_p13 = scmp.ne.s32.totalorder %s1472_s22, 0 }
 0x1c7   : > { %p940_p9 = scmp.ne.s32.totalorder %s1402_s25, %s939_s21  ;;  %s1044_s29 = smov [#allocation10]  }
 0x1c8   : > { %s943_s27 = sshll.u32 %s1044_s29, 4  ;;  %s944_s27 = int_to_ptr.vmem [resolvable:$false] %s943_s27 }
 0x1c9   : > { %p941_p10 = pnand %p940_p9, %p1489_p13  ;;  %s945_s13 = scalar_lea.vmem %s944_s27, 4096 }
 0x1ca   : > { %p946_p3 = scmp.lt.s32.totalorder %s1402_s25, %s944_s27  ;;  %p947_p7 = scmp.lt.s32.totalorder %s945_s13, %s939_s21 }
 0x1cb   : > { %p942_p12 = pneg %p941_p10 }
 0x1cc   : > { %p948_p8 = por %p947_p7, %p946_p3 }
 0x1ce   : > { %p949_p6 = pnand %p948_p8, %p942_p12 }
 0x1d0   : > { %952 = shalt.err (!%p949_p6)
}
 0x1d1   : > { %s953_s20 = scalar_lea.hbm %s1399_s2, 2048  ;;  %s957_s6 = scalar_lea.hbm %s1458_s5, 26624 }
 0x1d2   : > { %p954_p11 = scmp.ne.s32.totalorder %s1399_s2, %s953_s20  ;;  %p958_p1 = scmp.lt.u32.totalorder %s1399_s2, %s1458_s5 }
 0x1d3   : > { %p959_p2 = scmp.lt.u32.totalorder %s957_s6, %s953_s20  ;;  %p961_p9 = scmp.lt.u32.totalorder %s953_s20, %s1399_s2 }
 0x1d4   : > { %p955_p0 = pnand %p954_p11, %p1489_p13 }
 0x1d5   : > { %p960_p5 = por %p959_p2, %p958_p1 }
 0x1d6   : > { %p956_p4 = pneg %p955_p0 }
 0x1d7   : > { %p962_p10 = por %p961_p9, %p960_p5 }
 0x1d9   : > { %p963_p12 = pnand %p962_p10, %p956_p4 }
 0x1db   : > { %966 = shalt.err (!%p963_p12)
}
 0x1dc   : > { %s1045_s16 = smov 128   ;;  %s1046_s19 = smov 8  }
 0x1dd   : > { %777 = dma.vmem_to_hbm [thread:$0]  (%p1489_p13), %s1402_s25, 2048, %s1399_s2, %s493_s24, %s1045_s16, %s1045_s16, %s1046_s19  }
 0x1de PF: > { %p793_p3 = scmp.ge.s32.totalorder %s1035_s12, 2  ;;  %s521_s0 = sand.u32 1, %s1023_s9  }
 0x1df   : > { %p1490_p7 = scmp.ne.s32.totalorder %s1473_s23, 0  ;;  %s522_s30 = scalar_lea.sflag [#allocation7], %s521_s0 }
 0x1e1   : > { %p789_p8 = pnand %p793_p3, %p1490_p7 }
 0x1e3   : > { %1006 = dma.done.wait (!%p789_p8), %s522_s30, 2048  }
 0x1e4   : > { %1008 = vsyncadd (!%p789_p8), %s522_s30, 4294965248  ;;  %s1491_s22 = sld [smem:[#allocation17_spill]]  ;;  %p29_p13 = scmp.ge.s32.totalorder %s1132_s15, 15  }
 0x1e5   : > { %s1492_s0 = smov %s1015_s1  ;;  %s1493_s1 = smov %s1019_s8 }
 0x1e6   : > { %s1494_s8 = smov %s1250_s28  ;;  %s1495_s9 = smov %s1027_s10 }
 0x1e7   : > { %s1496_s10 = smov %s1031_s11  ;;  %s1498_s12 = smov %s1132_s15 }
 0x1e8   :  { %31 = sbr.rel (!%p29_p13) target bundleno = 31 (0x1f), region = 101 }
 0x1ea   : > { %s1497_s11 = smov %s1491_s22 }
 0x1ef   :  { %527 = vsyncpa [#allocation6], 1 }
 0x1f0   :  { %529 = vsyncpa [#allocation6 + $0x1], 1 }
 0x1f1   :  { %530 = vsyncpa [#allocation9], 1 }
 0x1f2   :  { %532 = vsyncpa [#allocation9 + $0x1], 1 }
 0x1f3   :  { %533 = vsyncpa [#allocation7], 1 }
 0x1f4   :  { %535 = vsyncpa [#allocation7 + $0x1], 1 }

</bundles_post_ra>
